<compile_context>
chip_gen: v7x
topology: tpu7x:2x2x1
jax: 0.10.0
libtpu: 0.0.40
codegen_flags: <defaults>
</compile_context>

<pallas_src>
import functools

import jax
import jax.numpy as jnp
import numpy as np
from jax.experimental import pallas as pl
from jax.experimental.pallas import tpu as pltpu


INPUT_SIZE = 268 + 8    # 276
HIDDEN_SIZE = 512
OUTPUT_SIZE = 268


def obs_img_nn_kernel(x_ref, w1_ref, b1_ref, w2_ref, b2_ref, y_ref):
    """Fused Linear(276->512) + Tanh + Dropout(eval=identity) + Linear(512->Op)."""
    # Matmul operands may be bf16; accumulation is always f32 on the MXU.
    h = jnp.tanh(
        jnp.dot(x_ref[...], w1_ref[...], preferred_element_type=jnp.float32)
        + b1_ref[...]
    )
    # TODO(synk): nn.Dropout(0.2) is stochastic only in training mode; eval-mode
    # (identity) semantics are implemented here.
    y = (
        jnp.dot(h.astype(w2_ref.dtype), w2_ref[...],
                preferred_element_type=jnp.float32)
        + b2_ref[...]
    )
    y_ref[...] = y.astype(y_ref.dtype)


def _round_up(n, m):
    return ((n + m - 1) // m) * m


def prepare_params(params, compute_dtype=jnp.bfloat16):
    """One-time weight prep, hoisted out of the per-call path.

    Transposes weights to (in, out), pads ONLY the output feature dim to a lane
    multiple (268 -> 384, zero columns are sliced off later), and casts the
    matmul operands to `compute_dtype`.  Biases stay f32.
    """
    H, I = params["w1"].shape          # (512, 276)
    O = params["w2"].shape[0]          # 268
    Op = _round_up(O, 128)             # 384 -> unmasked (lane-dense) stores

    w1t = jnp.asarray(params["w1"].T, compute_dtype)                       # (I, H)
    b1 = jnp.asarray(params["b1"][None, :], jnp.float32)                   # (1, H)
    w2t = jnp.pad(jnp.asarray(params["w2"].T, compute_dtype),
                  ((0, 0), (0, Op - O)))                                   # (H, Op)
    b2 = jnp.pad(jnp.asarray(params["b2"][None, :], jnp.float32),
                 ((0, 0), (0, Op - O)))                                    # (1, Op)
    prepared = {"w1t": w1t, "b1": b1, "w2t": w2t, "b2": b2}
    return prepared, O


def _pick_batch_tile(B, max_block_b):
    """Pick (tb, Bp). For B > 16 ensure >= 2 tiles so the 'parallel' axis can
    shard across both TensorCores on v7x; tiles are multiples of 16 (covers
    bf16 sublane packing)."""
    B8 = _round_up(B, 8)
    if B8 <= 16:
        return B8, B8                      # single full-extent block
    half = _round_up(-(-B8 // 2), 16)      # ~half the batch, rounded to x16
    tb = min(max_block_b, half)
    Bp = _round_up(B, tb)
    return tb, Bp


@functools.partial(jax.jit, static_argnames=("out_features", "max_block_b"))
def obs_img_nn_forward(x, prepared, *, out_features, max_block_b=512):
    """x: (B, 276) float32 -> y: (B, 268) float32. Single fused pallas_call."""
    B, I = x.shape
    w1t, b1, w2t, b2 = prepared["w1t"], prepared["b1"], prepared["w2t"], prepared["b2"]
    H = w1t.shape[1]
    Op = w2t.shape[1]
    O = out_features

    tb, Bp = _pick_batch_tile(B, max_block_b)
    grid = (Bp // tb,)

    # Cast x to the matmul compute dtype and pad batch to a tile multiple;
    # both fuse under jit.  The 276 feature dim is left unpadded.
    x_p = x.astype(w1t.dtype)
    if Bp != B:
        x_p = jnp.pad(x_p, ((0, Bp - B), (0, 0)))

    itemsize = jnp.dtype(w1t.dtype).itemsize
    cost = pl.CostEstimate(
        flops=2 * Bp * (I * H + H * Op),
        transcendentals=Bp * H,
        bytes_accessed=(Bp * I * itemsize + I * H * itemsize + H * 4
                        + H * Op * itemsize + Op * 4 + Bp * Op * 4),
    )

    y_p = pl.pallas_call(
        obs_img_nn_kernel,
        out_shape=jax.ShapeDtypeStruct((Bp, Op), jnp.float32),
        grid_spec=pltpu.PrefetchScalarGridSpec(
            num_scalar_prefetch=0,
            grid=grid,
            in_specs=[
                pl.BlockSpec((tb, I), lambda i: (i, 0)),    # x batch tile (K unpadded)
                pl.BlockSpec((I, H), lambda i: (0, 0)),     # W1^T, resident
                pl.BlockSpec((1, H), lambda i: (0, 0)),     # b1
                pl.BlockSpec((H, Op), lambda i: (0, 0)),    # W2^T, resident
                pl.BlockSpec((1, Op), lambda i: (0, 0)),    # b2
            ],
            out_specs=pl.BlockSpec((tb, Op), lambda i: (i, 0)),
        ),
        compiler_params=pltpu.CompilerParams(
            dimension_semantics=("parallel",),   # batch tiles are independent
        ),
        cost_estimate=cost,
    )(x_p, w1t, b1, w2t, b2)

    return y_p[:B, :O]


def reference_forward(x, params):
    """Pure-JAX reference with PyTorch Linear/Tanh semantics (dropout=identity)."""
    h = jnp.tanh(x @ params["w1"].T + params["b1"])
    return h @ params["w2"].T + params["b2"]


def make_params(key, input_size, hidden_size, output_size):
    ks = jax.random.split(key, 4)
    k1 = 1.0 / np.sqrt(input_size)    # PyTorch nn.Linear init bound
    k2 = 1.0 / np.sqrt(hidden_size)
    u = lambda k, shape, s: jax.random.uniform(k, shape, jnp.float32, -s, s)
    return {
        "w1": u(ks[0], (hidden_size, input_size), k1),
        "b1": u(ks[1], (hidden_size,), k1),
        "w2": u(ks[2], (output_size, hidden_size), k2),
        "b2": u(ks[3], (output_size,), k2),
    }


if __name__ == "__main__":
    BATCH = 8

    key = jax.random.PRNGKey(0)
    k_x, k_p = jax.random.split(key)
    x = jax.random.normal(k_x, (BATCH, INPUT_SIZE), jnp.float32)
    params = make_params(k_p, INPUT_SIZE, HIDDEN_SIZE, OUTPUT_SIZE)

    y_ref = reference_forward(x, params)

    # f32 compute path: tight tolerance against the reference.
    prep_f32, out_f = prepare_params(params, compute_dtype=jnp.float32)
    y_f32 = jax.block_until_ready(obs_img_nn_forward(x, prep_f32, out_features=out_f))
    np.testing.assert_allclose(np.asarray(y_f32), np.asarray(y_ref),
                               rtol=1e-4, atol=1e-4)

    # bf16 compute path (fast default): looser tolerance for bf16 operands.
    prep_bf16, _ = prepare_params(params, compute_dtype=jnp.bfloat16)
    y_bf16 = jax.block_until_ready(obs_img_nn_forward(x, prep_bf16, out_features=out_f))
    np.testing.assert_allclose(np.asarray(y_bf16), np.asarray(y_ref),
                               rtol=5e-2, atol=5e-2)

    print("KERNEL_OK")
</pallas_src>

<mosaic_0001>
module attributes {stable_mosaic.version = 11 : i64} {
  func.func @obs_img_nn_kernel(%arg0: i32, %arg1: memref<8x276xf32, #tpu.memory_space<vmem>>, %arg2: memref<276x512xf32, #tpu.memory_space<vmem>>, %arg3: memref<1x512xf32, #tpu.memory_space<vmem>>, %arg4: memref<512x384xf32, #tpu.memory_space<vmem>>, %arg5: memref<1x384xf32, #tpu.memory_space<vmem>>, %arg6: memref<8x384xf32, #tpu.memory_space<vmem>>) attributes {dimension_semantics = [#tpu.dimension_semantics<parallel>], iteration_bounds = array<i64: 1>, scalar_prefetch = 0 : i64, scratch_operands = 0 : i64, tpu.core_type = #tpu.core_type<tc>, window_params = [{transform_indices = @transform_0, window_bounds = array<i64: 8, 276>}, {pipeline_mode = #tpu.pipeline_mode<synchronous>, transform_indices = @transform_1, window_bounds = array<i64: 276, 512>}, {pipeline_mode = #tpu.pipeline_mode<synchronous>, transform_indices = @transform_2, window_bounds = array<i64: 1, 512>}, {pipeline_mode = #tpu.pipeline_mode<synchronous>, transform_indices = @transform_3, window_bounds = array<i64: 512, 384>}, {pipeline_mode = #tpu.pipeline_mode<synchronous>, transform_indices = @transform_4, window_bounds = array<i64: 1, 384>}, {transform_indices = @transform_5, window_bounds = array<i64: 8, 384>}]} {
    %c0 = arith.constant 0 : index
    %c0_0 = arith.constant 0 : index
    %0 = vector.load %arg1[%c0, %c0_0] : memref<8x276xf32, #tpu.memory_space<vmem>>, vector<8x276xf32>
    %c0_1 = arith.constant 0 : index
    %c0_2 = arith.constant 0 : index
    %1 = vector.load %arg2[%c0_1, %c0_2] : memref<276x512xf32, #tpu.memory_space<vmem>>, vector<276x512xf32>
    %cst = arith.constant dense<0.000000e+00> : vector<8x512xf32>
    %2 = tpu.matmul %0, %1, %cst {dimension_numbers = #tpu.dot_dimension_numbers<[1], [0], [0], [1], [0, 0, 1, 1], [], []>} : vector<8x276xf32>, vector<276x512xf32>, vector<8x512xf32> -> vector<8x512xf32>
    %c0_3 = arith.constant 0 : index
    %c0_4 = arith.constant 0 : index
    %3 = vector.load %arg3[%c0_3, %c0_4] : memref<1x512xf32, #tpu.memory_space<vmem>>, vector<1x512xf32>
    %4 = vector.broadcast %3 : vector<1x512xf32> to vector<8x512xf32>
    %5 = arith.addf %2, %4 : vector<8x512xf32>
    %6 = math.tanh %5 : vector<8x512xf32>
    %c0_5 = arith.constant 0 : index
    %c0_6 = arith.constant 0 : index
    %7 = vector.load %arg4[%c0_5, %c0_6] : memref<512x384xf32, #tpu.memory_space<vmem>>, vector<512x384xf32>
    %cst_7 = arith.constant dense<0.000000e+00> : vector<8x384xf32>
    %8 = tpu.matmul %6, %7, %cst_7 {dimension_numbers = #tpu.dot_dimension_numbers<[1], [0], [0], [1], [0, 0, 1, 1], [], []>} : vector<8x512xf32>, vector<512x384xf32>, vector<8x384xf32> -> vector<8x384xf32>
    %c0_8 = arith.constant 0 : index
    %c0_9 = arith.constant 0 : index
    %9 = vector.load %arg5[%c0_8, %c0_9] : memref<1x384xf32, #tpu.memory_space<vmem>>, vector<1x384xf32>
    %10 = vector.broadcast %9 : vector<1x384xf32> to vector<8x384xf32>
    %11 = arith.addf %8, %10 : vector<8x384xf32>
    %c0_10 = arith.constant 0 : index
    %c0_11 = arith.constant 0 : index
    %12 = vector.load %arg6[%c0_10, %c0_11] : memref<8x384xf32, #tpu.memory_space<vmem>>, vector<8x384xf32>
    tpu.vector_store %arg6[%c0_10, %c0_11], %11 {strides = array<i32>} : memref<8x384xf32, #tpu.memory_space<vmem>>, vector<8x384xf32>,
    return
  }
  func.func @transform_0(%arg0: i32) -> (i32, i32) {
    %c0_i32 = arith.constant 0 : i32
    %c0_i32_0 = arith.constant 0 : i32
    return %arg0, %c0_i32 : i32, i32
  }
  func.func @transform_1(%arg0: i32) -> (i32, i32) {
    %c0_i32 = arith.constant 0 : i32
    %c0_i32_0 = arith.constant 0 : i32
    %c0_i32_1 = arith.constant 0 : i32
    return %c0_i32, %c0_i32_0 : i32, i32
  }
  func.func @transform_2(%arg0: i32) -> (i32, i32) {
    %c0_i32 = arith.constant 0 : i32
    %c0_i32_0 = arith.constant 0 : i32
    %c0_i32_1 = arith.constant 0 : i32
    return %c0_i32, %c0_i32_0 : i32, i32
  }
  func.func @transform_3(%arg0: i32) -> (i32, i32) {
    %c0_i32 = arith.constant 0 : i32
    %c0_i32_0 = arith.constant 0 : i32
    %c0_i32_1 = arith.constant 0 : i32
    return %c0_i32, %c0_i32_0 : i32, i32
  }
  func.func @transform_4(%arg0: i32) -> (i32, i32) {
    %c0_i32 = arith.constant 0 : i32
    %c0_i32_0 = arith.constant 0 : i32
    %c0_i32_1 = arith.constant 0 : i32
    return %c0_i32, %c0_i32_0 : i32, i32
  }
  func.func @transform_5(%arg0: i32) -> (i32, i32) {
    %c0_i32 = arith.constant 0 : i32
    %c0_i32_0 = arith.constant 0 : i32
    return %arg0, %c0_i32 : i32, i32
  }
}

</mosaic_0001>

<bundles_post_ra>
// kernel: obs_img_nn_forward.1
= control target key start
LH: loop header
LB: loop body
LE: loop exit
PB: predicated region body
PF: predicated region fallthrough
CT: control target
= control target key end

     0   :  { %10 = vsyncpa [#allocation3], 0  ;;  %s1748_s0 = inlined_call_operand.hbm [shape: f32[8,276], index: 0, kind: input, shape index: {}]   ;;  %s1749_s1 = inlined_call_operand.hbm [shape: f32[276,512], index: 1, kind: input, shape index: {}]   ;;  %s1750_s2 = inlined_call_operand.hbm [shape: f32[1,512], index: 2, kind: input, shape index: {}]   ;;  %s1751_s3 = inlined_call_operand.hbm [shape: f32[512,384], index: 3, kind: input, shape index: {}]   ;;  %s1752_s4 = inlined_call_operand.vmem [shape: f32[1,384], index: 4, kind: input, shape index: {}]   ;;  %s1753_s5 = inlined_call_operand.hbm [shape: f32[8,384], index: 5, kind: output, shape index: {}]  }
   0x1   :  { %11 = vsyncpa [#allocation6], 0 }
   0x2   :  { %12 = vsyncpa [#allocation9], 0 }
   0x3   :  { %13 = vsyncpa [#allocation4], 0  ;;  %s1605_s18 = smov [#allocation5]   ;;  %s1487_s22 = scalar_lea.hbm %s1749_s1, 17920 }
   0x4   :  { %s29_s19 = sshll.u32 %s1605_s18, 4  ;;  %p1488_p0 = scmp.ne.s32.totalorder %s1749_s1, %s1487_s22  ;;  %s30_s19 = int_to_ptr.vmem [resolvable:$true] %s29_s19 }
   0x5   :  { %p1491_p1 = scmp.lt.u32.totalorder %s1487_s22, %s1749_s1 }
   0x7   :  { %p1493_p2 = pnand %p1491_p1, %p1488_p0 }
   0x9   :  { %1496 = shalt.err (!%p1493_p2)
}
   0xa   :  { %s1497_s27 = scalar_lea.vmem %s30_s19, 17920  ;;  %p1502_p4 = scmp.lt.s32.totalorder %s30_s19, %s30_s19 }
   0xb   :  { %p1498_p3 = scmp.ne.s32.totalorder %s30_s19, %s1497_s27  ;;  %p1503_p5 = scmp.lt.s32.totalorder %s1497_s27, %s1497_s27 }
   0xd   :  { %p1504_p6 = por %p1503_p5, %p1502_p4 }
   0xf   :  { %p1505_p7 = pnand %p1504_p6, %p1498_p3 }
  0x11   :  { %1508 = shalt.err (!%p1505_p7)
}
  0x12   :  { %s1606_s28 = smov 512   ;;  %s1607_s29 = smov 32  }
  0x13   :  { %35 = dma.hbm_to_vmem [thread:$0]  %s1749_s1, 17920, %s30_s19, [#allocation6], %s1606_s28, %s1606_s28, %s1607_s29  }
  0x14   :  { %s1608_s7 = smov [#allocation2]   ;;  %s1609_s9 = smov [#allocation7]  }
  0x15   :  { %s20_s8 = sshll.u32 %s1608_s7, 4  ;;  %s42_s10 = sshll.u32 %s1609_s9, 4  ;;  %s21_s8 = int_to_ptr.vmem [resolvable:$true] %s20_s8  ;;  %s43_s10 = int_to_ptr.vmem [resolvable:$true] %s42_s10 }
  0x16   :  { %s1509_s13 = scalar_lea.hbm %s1748_s0, 384 }
  0x17   :  { %p1510_p8 = scmp.ne.s32.totalorder %s1748_s0, %s1509_s13  ;;  %p1513_p9 = scmp.lt.u32.totalorder %s1509_s13, %s1748_s0 }
  0x19   :  { %p1515_p10 = pnand %p1513_p9, %p1510_p8 }
  0x1b   :  { %1518 = shalt.err (!%p1515_p10)
}
  0x1c   :  { %s1519_s1 = scalar_lea.vmem %s21_s8, 384  ;;  %p1524_p12 = scmp.lt.s32.totalorder %s21_s8, %s21_s8 }
  0x1d   :  { %p1520_p11 = scmp.ne.s32.totalorder %s21_s8, %s1519_s1  ;;  %p1525_p13 = scmp.lt.s32.totalorder %s1519_s1, %s1519_s1 }
  0x1f   :  { %p1526_p0 = por %p1525_p13, %p1524_p12 }
  0x21   :  { %p1527_p1 = pnand %p1526_p0, %p1520_p11 }
  0x23   :  { %1530 = shalt.err (!%p1527_p1)
}
  0x24   :  { %23 = dma.hbm_to_vmem [thread:$0]  %s1748_s0, 384, %s21_s8, [#allocation3]  }
  0x25   :  { %s1531_s22 = scalar_lea.hbm %s1750_s2, 64 }
  0x26   :  { %p1532_p2 = scmp.ne.s32.totalorder %s1750_s2, %s1531_s22  ;;  %p1535_p3 = scmp.lt.u32.totalorder %s1531_s22, %s1750_s2 }
  0x28   :  { %p1537_p4 = pnand %p1535_p3, %p1532_p2 }
  0x2a   :  { %1540 = shalt.err (!%p1537_p4)
}
  0x2b   :  { %s1541_s27 = scalar_lea.vmem %s43_s10, 64  ;;  %p1546_p6 = scmp.lt.s32.totalorder %s43_s10, %s43_s10 }
  0x2c   :  { %p1542_p5 = scmp.ne.s32.totalorder %s43_s10, %s1541_s27  ;;  %p1547_p7 = scmp.lt.s32.totalorder %s1541_s27, %s1541_s27 }
  0x2e   :  { %p1548_p8 = por %p1547_p7, %p1546_p6 }
  0x30   :  { %p1549_p9 = pnand %p1548_p8, %p1542_p5 }
  0x32   :  { %1552 = shalt.err (!%p1549_p9)
}
  0x33   :  { %45 = dma.hbm_to_vmem [thread:$0]  %s1750_s2, 64, %s43_s10, [#allocation6]  }
  0x34   :  { %s1610_s29 = smov [#allocation8]   ;;  %s1553_s8 = scalar_lea.hbm %s1751_s3, 24576 }
  0x35   :  { %s51_s30 = sshll.u32 %s1610_s29, 4  ;;  %p1554_p10 = scmp.ne.s32.totalorder %s1751_s3, %s1553_s8  ;;  %s52_s30 = int_to_ptr.vmem [resolvable:$true] %s51_s30 }
  0x36   :  { %p1557_p11 = scmp.lt.u32.totalorder %s1553_s8, %s1751_s3 }
  0x38   :  { %p1559_p12 = pnand %p1557_p11, %p1554_p10 }
  0x3a   :  { %1562 = shalt.err (!%p1559_p12)
}
  0x3b   :  { %s1563_s14 = scalar_lea.vmem %s52_s30, 24576  ;;  %p1568_p0 = scmp.lt.s32.totalorder %s52_s30, %s52_s30 }
  0x3c   :  { %p1564_p13 = scmp.ne.s32.totalorder %s52_s30, %s1563_s14  ;;  %p1569_p1 = scmp.lt.s32.totalorder %s1563_s14, %s1563_s14 }
  0x3e   :  { %p1570_p2 = por %p1569_p1, %p1568_p0 }
  0x40   :  { %p1571_p3 = pnand %p1570_p2, %p1564_p13 }
  0x42   :  { %1574 = shalt.err (!%p1571_p3)
}
  0x43   :  { %s1611_s2 = smov 384   ;;  %s1612_s10 = smov 24  }
  0x44   :  { %57 = dma.hbm_to_vmem [thread:$0]  %s1751_s3, 24576, %s52_s30, [#allocation9], %s1611_s2, %s1611_s2, %s1612_s10  }
  0x45   :  { %1597 = dma.done.wait [#allocation3], 384  }
  0x46   :  { %1598 = vsyncadd [#allocation3], 4294966912 }
  0x47   :  { %1599 = dma.done.wait [#allocation6], 17984  }
  0x48   :  { %1600 = vsyncadd [#allocation6], 4294949312 }
  0x49   :  { %1601 = dma.done.wait [#allocation9], 24576  }
  0x4a   :  { %1602 = vsyncadd [#allocation9], 4294942720  ;;  %v1613_v0 = vmov 0.0   ;;  %v76_v1 = vld [vmem:[#allocation5 + $0x8] sm:$0xff]  ;;  %v75_v3 = vld [vmem:[#allocation5] sm:$0xff]  ;;  %vm241_vm0 = vcmask 1043456  }
  0x4b   :  { %389 = vmatprep.mubr.f32.mxu1 %v1613_v0  ;;  %v80_v2 = vld [vmem:[#allocation5 + $0x28] sm:$0xff]  ;;  %v79_v5 = vld [vmem:[#allocation5 + $0x20] sm:$0xff]  ;;  %v78_v34 = vld [vmem:[#allocation5 + $0x18] sm:$0xff]  ;;  %vm237_vm1 = vcmask 162816   ;;  %s1614_s1 = smov [#allocation10]  }
  0x4c   :  { %v1129_v4 = vpack.c.bf16 %v80_v2, %v76_v1  ;;  %v84_v6 = vld [vmem:[#allocation5 + $0x48] sm:$0xff]  ;;  %v1131_v8 = vpack.c.bf16 %v79_v5, %v75_v3  ;;  %v83_v10 = vld [vmem:[#allocation5 + $0x40] sm:$0xff]  ;;  %v82_v35 = vld [vmem:[#allocation5 + $0x38] sm:$0xff]  ;;  %s1042_s18 = sshll.u32 %s1614_s1, 4  ;;  %s1043_s18 = int_to_ptr.vmem [resolvable:$true] %s1042_s18 }
  0x4d   :  { %v88_v7 = vld [vmem:[#allocation5 + $0x68] sm:$0xff]  ;;  %v87_v11 = vld [vmem:[#allocation5 + $0x60] sm:$0xff]  ;;  %v1197_v38 = vpack.c.bf16 %v82_v35, %v78_v34  ;;  %v77_v39 = vld [vmem:[#allocation5 + $0x10] sm:$0xff]  ;;  %p1580_p5 = scmp.lt.s32.totalorder %s1043_s18, %s1043_s18 }
  0x4e   :  { %v1133_v9 = vpack.c.bf16 %v88_v7, %v84_v6  ;;  %v92_v12 = vld [vmem:[#allocation5 + $0x88] sm:$0xff]  ;;  %1130 = vmatprep.subr.bf16.mxu0 %v1129_v4  ;;  %v1135_v14 = vpack.c.bf16 %v87_v11, %v83_v10  ;;  %v91_v16 = vld [vmem:[#allocation5 + $0x80] sm:$0xff]  ;;  %v81_v40 = vld [vmem:[#allocation5 + $0x30] sm:$0xff] }
  0x4f   :  { %v96_v13 = vld [vmem:[#allocation5 + $0xa8] sm:$0xff]  ;;  %1132 = vmatpush1.bf16.msra.mxu0 %v1131_v8  ;;  %v95_v17 = vld [vmem:[#allocation5 + $0xa0] sm:$0xff]  ;;  %v1695_v45 = vld [vmem:[#allocation2 + $0x10] sm:$0xff]  ;;  %v1199_v46 = vpack.c.bf16 %v81_v40, %v77_v39 }
  0x50   :  { %1134 = vmatprep.subr.bf16.mxu0 %v1133_v9  ;;  %v1137_v15 = vpack.c.bf16 %v96_v13, %v92_v12  ;;  %v100_v18 = vld [vmem:[#allocation5 + $0xc8] sm:$0xff]  ;;  %v1139_v22 = vpack.c.bf16 %v95_v17, %v91_v16  ;;  %v203_v24 = vld [vmem:[#allocation5 + $0x400] sm:$0xff]  ;;  %v86_v47 = vld [vmem:[#allocation5 + $0x58] sm:$0xff] }
  0x51   :  { %v104_v19 = vld [vmem:[#allocation5 + $0xe8] sm:$0xff]  ;;  %v207_v25 = vld [vmem:[#allocation5 + $0x420] sm:$0xff]  ;;  %v90_v48 = vld [vmem:[#allocation5 + $0x78] sm:$0xff] }
  0x52   :  { %v204_v20 = vld [vmem:[#allocation5 + $0x408] sm:$0xff]  ;;  %v1141_v26 = vpack.c.bf16 %v104_v19, %v100_v18  ;;  %v99_v27 = vld [vmem:[#allocation5 + $0xc0] sm:$0xff]  ;;  %v1195_v29 = vpack.c.bf16 %v207_v25, %v203_v24  ;;  %v1201_v49 = vpack.c.bf16 %v90_v48, %v86_v47  ;;  %v85_v50 = vld [vmem:[#allocation5 + $0x50] sm:$0xff] }
  0x53   :  { %v208_v21 = vld [vmem:[#allocation5 + $0x428] sm:$0xff]  ;;  %1136 = vmatpush1.bf16.msra.mxu0 %v1135_v14  ;;  %v103_v28 = vld [vmem:[#allocation5 + $0xe0] sm:$0xff]  ;;  %v89_v51 = vld [vmem:[#allocation5 + $0x70] sm:$0xff] }
  0x54   :  { %v1193_v23 = vpack.c.bf16 %v208_v21, %v204_v20  ;;  %1138 = vmatprep.subr.bf16.mxu0 %v1137_v15  ;;  %v212_v30 = vld [vmem:[#allocation5 + $0x448] sm:$0xf]  ;;  %v107_v33 = vld [vmem:[#allocation5 + $0x100] sm:$0xff]  ;;  %v1143_v36 = vpack.c.bf16 %v103_v28, %v99_v27  ;;  %v94_v56 = vld [vmem:[#allocation5 + $0x98] sm:$0xff]  ;;  %v1203_v60 = vpack.c.bf16 %v89_v51, %v85_v50 }
  0x55   :  { %v108_v31 = vld [vmem:[#allocation5 + $0x108] sm:$0xff]  ;;  %v211_v37 = vld [vmem:[#allocation5 + $0x440] sm:$0xf]  ;;  %v98_v57 = vld [vmem:[#allocation5 + $0xb8] sm:$0xff] }
  0x56   :  { %v112_v32 = vld [vmem:[#allocation5 + $0x128] sm:$0xff]  ;;  %1194 = vmatprep.subr.bf16.mxu1 %v1193_v23  ;;  %v111_v42 = vld [vmem:[#allocation5 + $0x120] sm:$0xff]  ;;  %v1205_v61 = vpack.c.bf16 %v98_v57, %v94_v56  ;;  %v93_v62 = vld [vmem:[#allocation5 + $0x90] sm:$0xff] }
  0x57   :  { %1196 = vmatpush1.bf16.msra.mxu1 %v1195_v29  ;;  %1140 = vmatpush1.bf16.msra.mxu0 %v1139_v22  ;;  %v1145_v41 = vpack.c.bf16 %v112_v32, %v108_v31  ;;  %v116_v43 = vld [vmem:[#allocation5 + $0x148] sm:$0xff]  ;;  %v1147_v52 = vpack.c.bf16 %v111_v42, %v107_v33  ;;  %v115_v53 = vld [vmem:[#allocation5 + $0x140] sm:$0xff]  ;;  %v97_v63 = vld [vmem:[#allocation5 + $0xb0] sm:$0xff] }
  0x58   :  { %1053 = vmatprep.subr.msk.mxu1 %vm241_vm0, %v212_v30  ;;  %1142 = vmatprep.subr.bf16.mxu0 %v1141_v26  ;;  %v120_v44 = vld [vmem:[#allocation5 + $0x168] sm:$0xff]  ;;  %v119_v55 = vld [vmem:[#allocation5 + $0x160] sm:$0xff]  ;;  %v102_v2 = vld [vmem:[#allocation5 + $0xd8] sm:$0xff]  ;;  %v1207_v9 = vpack.c.bf16 %v97_v63, %v93_v62 }
  0x59   :  { %v1149_v54 = vpack.c.bf16 %v120_v44, %v116_v43  ;;  %v124_v58 = vld [vmem:[#allocation5 + $0x188] sm:$0xff]  ;;  %v1151_v1 = vpack.c.bf16 %v119_v55, %v115_v53  ;;  %v106_v3 = vld [vmem:[#allocation5 + $0xf8] sm:$0xff]  ;;  %v123_v5 = vld [vmem:[#allocation5 + $0x180] sm:$0xff] }
  0x5a   :  { %v128_v59 = vld [vmem:[#allocation5 + $0x1a8] sm:$0xff]  ;;  %v127_v6 = vld [vmem:[#allocation5 + $0x1a0] sm:$0xff]  ;;  %v1209_v10 = vpack.c.bf16 %v106_v3, %v102_v2  ;;  %v101_v11 = vld [vmem:[#allocation5 + $0xd0] sm:$0xff] }
  0x5b   :  { %1054 = vmatpush1.msk.msra.mxu1 %vm241_vm0, %v211_v37  ;;  %1144 = vmatpush1.bf16.msra.mxu0 %v1143_v36  ;;  %v1153_v4 = vpack.c.bf16 %v128_v59, %v124_v58  ;;  %v132_v7 = vld [vmem:[#allocation5 + $0x1c8] sm:$0xff]  ;;  %v105_v12 = vld [vmem:[#allocation5 + $0xf0] sm:$0xff]  ;;  %v1155_v13 = vpack.c.bf16 %v127_v6, %v123_v5  ;;  %v110_v14 = vld [vmem:[#allocation5 + $0x118] sm:$0xff] }
  0x5c   :  { %1198 = vmatprep.subr.bf16.mxu1 %v1197_v38  ;;  %1146 = vmatprep.subr.bf16.mxu0 %v1145_v41  ;;  %v136_v8 = vld [vmem:[#allocation5 + $0x1e8] sm:$0xff]  ;;  %v114_v15 = vld [vmem:[#allocation5 + $0x138] sm:$0xff]  ;;  %v131_v17 = vld [vmem:[#allocation5 + $0x1c0] sm:$0xff]  ;;  %v1211_v21 = vpack.c.bf16 %v105_v12, %v101_v11 }
  0x5d   :  { %1055 = vmatmul.mubr.msk.f32.vlgmr.msra.gmra.mrb[0].mxu1 %vm237_vm1, %v1695_v45  ;;  %v1157_v16 = vpack.c.bf16 %v136_v8, %v132_v7  ;;  %v135_v18 = vld [vmem:[#allocation5 + $0x1e0] sm:$0xff]  ;;  %v140_v19 = vld [vmem:[#allocation5 + $0x208] sm:$0xff]  ;;  %v1213_v22 = vpack.c.bf16 %v114_v15, %v110_v14  ;;  %v109_v23 = vld [vmem:[#allocation5 + $0x110] sm:$0xff] }
  0x5e   :  { %1200 = vmatpush1.bf16.msra.mxu1 %v1199_v46  ;;  %v144_v20 = vld [vmem:[#allocation5 + $0x228] sm:$0xff]  ;;  %v113_v24 = vld [vmem:[#allocation5 + $0x130] sm:$0xff]  ;;  %v1159_v25 = vpack.c.bf16 %v135_v18, %v131_v17  ;;  %v118_v26 = vld [vmem:[#allocation5 + $0x158] sm:$0xff] }
  0x5f   :  { %1202 = vmatprep.subr.bf16.mxu1 %v1201_v49  ;;  %1148 = vmatpush1.bf16.msra.mxu0 %v1147_v52  ;;  %v122_v27 = vld [vmem:[#allocation5 + $0x178] sm:$0xff]  ;;  %v1161_v28 = vpack.c.bf16 %v144_v20, %v140_v19  ;;  %v139_v29 = vld [vmem:[#allocation5 + $0x200] sm:$0xff]  ;;  %v148_v31 = vld [vmem:[#allocation5 + $0x248] sm:$0xff]  ;;  %v1215_v33 = vpack.c.bf16 %v113_v24, %v109_v23 }
  0x60   :  { %1150 = vmatprep.subr.bf16.mxu0 %v1149_v54  ;;  %v143_v30 = vld [vmem:[#allocation5 + $0x220] sm:$0xff]  ;;  %v152_v32 = vld [vmem:[#allocation5 + $0x268] sm:$0xff]  ;;  %v1217_v34 = vpack.c.bf16 %v122_v27, %v118_v26  ;;  %v117_v35 = vld [vmem:[#allocation5 + $0x150] sm:$0xff] }
  0x61   :  { %v121_v36 = vld [vmem:[#allocation5 + $0x170] sm:$0xff]  ;;  %v1163_v37 = vpack.c.bf16 %v143_v30, %v139_v29  ;;  %v126_v38 = vld [vmem:[#allocation5 + $0x198] sm:$0xff]  ;;  %v1165_v40 = vpack.c.bf16 %v152_v32, %v148_v31  ;;  %v147_v41 = vld [vmem:[#allocation5 + $0x240] sm:$0xff] }
  0x62   :  { %1204 = vmatpush1.bf16.msra.mxu1 %v1203_v60  ;;  %v130_v39 = vld [vmem:[#allocation5 + $0x1b8] sm:$0xff]  ;;  %v151_v42 = vld [vmem:[#allocation5 + $0x260] sm:$0xff]  ;;  %v156_v43 = vld [vmem:[#allocation5 + $0x288] sm:$0xff]  ;;  %v1219_v46 = vpack.c.bf16 %v121_v36, %v117_v35 }
  0x63   :  { %1206 = vmatprep.subr.bf16.mxu1 %v1205_v61  ;;  %1152 = vmatpush1.bf16.msra.mxu0 %v1151_v1  ;;  %v160_v44 = vld [vmem:[#allocation5 + $0x2a8] sm:$0xff]  ;;  %v1221_v47 = vpack.c.bf16 %v130_v39, %v126_v38  ;;  %v125_v48 = vld [vmem:[#allocation5 + $0x190] sm:$0xff]  ;;  %v1167_v50 = vpack.c.bf16 %v151_v42, %v147_v41  ;;  %v134_v51 = vld [vmem:[#allocation5 + $0x1d8] sm:$0xff] }
  0x64   :  { %1154 = vmatprep.subr.bf16.mxu0 %v1153_v4  ;;  %v129_v49 = vld [vmem:[#allocation5 + $0x1b0] sm:$0xff]  ;;  %v138_v52 = vld [vmem:[#allocation5 + $0x1f8] sm:$0xff]  ;;  %v1169_v53 = vpack.c.bf16 %v160_v44, %v156_v43  ;;  %v155_v54 = vld [vmem:[#allocation5 + $0x280] sm:$0xff] }
  0x65   :  { %v159_v55 = vld [vmem:[#allocation5 + $0x2a0] sm:$0xff]  ;;  %v73_v56 = vld [vmem:[#allocation2 + $0x8] sm:$0xff]  ;;  %v164_v57 = vld [vmem:[#allocation5 + $0x2c8] sm:$0xff]  ;;  %v1223_v59 = vpack.c.bf16 %v129_v49, %v125_v48  ;;  %v1225_v60 = vpack.c.bf16 %v138_v52, %v134_v51 }
  0x66   :  { %1208 = vmatpush1.bf16.msra.mxu1 %v1207_v9  ;;  %v168_v58 = vld [vmem:[#allocation5 + $0x2e8] sm:$0xff]  ;;  %318 = vmatprep.mubr.f32.mxu0 %v73_v56  ;;  %v133_v61 = vld [vmem:[#allocation5 + $0x1d0] sm:$0xff]  ;;  %v1171_v63 = vpack.c.bf16 %v159_v55, %v155_v54  ;;  %v142_v1 = vld [vmem:[#allocation5 + $0x218] sm:$0xff] }
  0x67   :  { %1210 = vmatprep.subr.bf16.mxu1 %v1209_v10  ;;  %1156 = vmatpush1.bf16.msra.mxu0 %v1155_v13  ;;  %v137_v62 = vld [vmem:[#allocation5 + $0x1f0] sm:$0xff]  ;;  %v146_v2 = vld [vmem:[#allocation5 + $0x238] sm:$0xff]  ;;  %v1173_v3 = vpack.c.bf16 %v168_v58, %v164_v57  ;;  %v163_v4 = vld [vmem:[#allocation5 + $0x2c0] sm:$0xff] }
  0x68   :  { %1158 = vmatprep.subr.bf16.mxu0 %v1157_v16  ;;  %460 = vmatprep.mubr.f32.mxu1 %v73_v56  ;;  %v167_v5 = vld [vmem:[#allocation5 + $0x2e0] sm:$0xff]  ;;  %v172_v6 = vld [vmem:[#allocation5 + $0x308] sm:$0xff]  ;;  %v1227_v8 = vpack.c.bf16 %v137_v62, %v133_v61  ;;  %v1229_v9 = vpack.c.bf16 %v146_v2, %v142_v1  ;;  %v141_v10 = vld [vmem:[#allocation5 + $0x210] sm:$0xff] }
  0x69   :  { %v176_v7 = vld [vmem:[#allocation5 + $0x328] sm:$0xff]  ;;  %v145_v11 = vld [vmem:[#allocation5 + $0x230] sm:$0xff]  ;;  %v1175_v12 = vpack.c.bf16 %v167_v5, %v163_v4  ;;  %v150_v13 = vld [vmem:[#allocation5 + $0x258] sm:$0xff] }
  0x6a   :  { %1212 = vmatpush1.bf16.msra.mxu1 %v1211_v21  ;;  %v154_v14 = vld [vmem:[#allocation5 + $0x278] sm:$0xff]  ;;  %v1177_v15 = vpack.c.bf16 %v176_v7, %v172_v6  ;;  %v171_v16 = vld [vmem:[#allocation5 + $0x300] sm:$0xff]  ;;  %v180_v18 = vld [vmem:[#allocation5 + $0x348] sm:$0xff]  ;;  %v1231_v20 = vpack.c.bf16 %v145_v11, %v141_v10 }
  0x6b   :  { %1214 = vmatprep.subr.bf16.mxu1 %v1213_v22  ;;  %1160 = vmatpush1.bf16.msra.mxu0 %v1159_v25  ;;  %v175_v17 = vld [vmem:[#allocation5 + $0x320] sm:$0xff]  ;;  %v184_v19 = vld [vmem:[#allocation5 + $0x368] sm:$0xff]  ;;  %v1233_v21 = vpack.c.bf16 %v154_v14, %v150_v13  ;;  %v149_v22 = vld [vmem:[#allocation5 + $0x250] sm:$0xff] }
  0x6c   :  { %1162 = vmatprep.subr.bf16.mxu0 %v1161_v28  ;;  %v153_v23 = vld [vmem:[#allocation5 + $0x270] sm:$0xff]  ;;  %v1179_v24 = vpack.c.bf16 %v175_v17, %v171_v16  ;;  %v158_v25 = vld [vmem:[#allocation5 + $0x298] sm:$0xff]  ;;  %v1181_v27 = vpack.c.bf16 %v184_v19, %v180_v18  ;;  %v179_v28 = vld [vmem:[#allocation5 + $0x340] sm:$0xff] }
  0x6d   :  { %v162_v26 = vld [vmem:[#allocation5 + $0x2b8] sm:$0xff]  ;;  %v183_v29 = vld [vmem:[#allocation5 + $0x360] sm:$0xff]  ;;  %v188_v30 = vld [vmem:[#allocation5 + $0x388] sm:$0xff]  ;;  %v1235_v32 = vpack.c.bf16 %v153_v23, %v149_v22 }
  0x6e   :  { %1216 = vmatpush1.bf16.msra.mxu1 %v1215_v33  ;;  %v192_v31 = vld [vmem:[#allocation5 + $0x3a8] sm:$0xff]  ;;  %v1237_v33 = vpack.c.bf16 %v162_v26, %v158_v25  ;;  %v161_v35 = vld [vmem:[#allocation5 + $0x2b0] sm:$0xff]  ;;  %v1183_v36 = vpack.c.bf16 %v183_v29, %v179_v28  ;;  %v170_v38 = vld [vmem:[#allocation5 + $0x2f8] sm:$0xff] }
  0x6f   :  { %1218 = vmatprep.subr.bf16.mxu1 %v1217_v34  ;;  %1164 = vmatpush1.bf16.msra.mxu0 %v1163_v37  ;;  %v157_v34 = vld [vmem:[#allocation5 + $0x290] sm:$0xff]  ;;  %v166_v37 = vld [vmem:[#allocation5 + $0x2d8] sm:$0xff]  ;;  %v1185_v39 = vpack.c.bf16 %v192_v31, %v188_v30  ;;  %v191_v41 = vld [vmem:[#allocation5 + $0x3a0] sm:$0xff] }
  0x70   :  { %1166 = vmatprep.subr.bf16.mxu0 %v1165_v40  ;;  %v187_v40 = vld [vmem:[#allocation5 + $0x380] sm:$0xff]  ;;  %v196_v42 = vld [vmem:[#allocation5 + $0x3c8] sm:$0xff]  ;;  %v1239_v44 = vpack.c.bf16 %v161_v35, %v157_v34  ;;  %v169_v48 = vld [vmem:[#allocation5 + $0x2f0] sm:$0xff] }
  0x71   :  { %v200_v43 = vld [vmem:[#allocation5 + $0x3e8] sm:$0xff]  ;;  %v1187_v49 = vpack.c.bf16 %v191_v41, %v187_v40  ;;  %v178_v51 = vld [vmem:[#allocation5 + $0x338] sm:$0xff]  ;;  %v199_v54 = vld [vmem:[#allocation5 + $0x3e0] sm:$0xff] }
  0x72   :  { %1220 = vmatpush1.bf16.msra.mxu1 %v1219_v46  ;;  %v1241_v46 = vpack.c.bf16 %v170_v38, %v166_v37  ;;  %v1189_v52 = vpack.c.bf16 %v200_v43, %v196_v42  ;;  %v543_v56 = vld [vmem:[#allocation8 + $0x8] sm:$0xff]  ;;  %v546_v57 = vld [vmem:[#allocation8 + $0x20] sm:$0xff]  ;;  %v182_v62 = vld [vmem:[#allocation5 + $0x358] sm:$0xff] }
  0x73   :  { %1222 = vmatprep.subr.bf16.mxu1 %v1221_v47  ;;  %1168 = vmatpush1.bf16.msra.mxu0 %v1167_v50  ;;  %v165_v47 = vld [vmem:[#allocation5 + $0x2d0] sm:$0xff]  ;;  %v174_v50 = vld [vmem:[#allocation5 + $0x318] sm:$0xff]  ;;  %v1265_v1 = vpack.c.bf16 %v546_v57, %v543_v56  ;;  %v542_v2 = vld [vmem:[#allocation8] sm:$0xff] }
  0x74   :  { %1170 = vmatprep.subr.bf16.mxu0 %v1169_v53  ;;  %v195_v53 = vld [vmem:[#allocation5 + $0x3c0] sm:$0xff]  ;;  %v1243_v55 = vpack.c.bf16 %v169_v48, %v165_v47  ;;  %v1245_v58 = vpack.c.bf16 %v178_v51, %v174_v50  ;;  %v552_v6 = vld [vmem:[#allocation8 + $0x50] sm:$0xff]  ;;  %v1700_v10 = vld [vmem:[#allocation2] sm:$0xff] }
  0x75   :  { %v1191_v61 = vpack.c.bf16 %v199_v54, %v195_v53  ;;  %v549_v5 = vld [vmem:[#allocation8 + $0x38] sm:$0xff]  ;;  %v551_v16 = vld [vmem:[#allocation8 + $0x48] sm:$0xff]  ;;  %v558_v19 = vld [vmem:[#allocation8 + $0x80] sm:$0xff] }
  0x76   :  { %1224 = vmatpush1.bf16.msra.mxu1 %v1223_v59  ;;  %v173_v59 = vld [vmem:[#allocation5 + $0x310] sm:$0xff]  ;;  %v190_v11 = vld [vmem:[#allocation5 + $0x398] sm:$0xff]  ;;  %v1269_v14 = vpack.c.bf16 %v552_v6, %v549_v5  ;;  %v570_v43 = vld [vmem:[#allocation8 + $0xe0] sm:$0xff] }
  0x77   :  { %1226 = vmatprep.subr.bf16.mxu1 %v1225_v60  ;;  %1172 = vmatpush1.bf16.msra.mxu0 %v1171_v63  ;;  %v177_v60 = vld [vmem:[#allocation5 + $0x330] sm:$0xff]  ;;  %v186_v63 = vld [vmem:[#allocation5 + $0x378] sm:$0xff]  ;;  %v566_v50 = vld [vmem:[#allocation8 + $0xc0] sm:$0xff] }
  0x78   :  { %1174 = vmatprep.subr.bf16.mxu0 %v1173_v3  ;;  %v545_v3 = vld [vmem:[#allocation8 + $0x18] sm:$0xff]  ;;  %v1247_v4 = vpack.c.bf16 %v177_v60, %v173_v59  ;;  %v1249_v7 = vpack.c.bf16 %v186_v63, %v182_v62  ;;  %v555_v18 = vld [vmem:[#allocation8 + $0x68] sm:$0xff]  ;;  %v564_v31 = vld [vmem:[#allocation8 + $0xb0] sm:$0xff] }
  0x79   :  { %v1267_v13 = vpack.c.bf16 %v545_v3, %v542_v2  ;;  %v193_v22 = vld [vmem:[#allocation5 + $0x3b0] sm:$0xff]  ;;  %v198_v23 = vld [vmem:[#allocation5 + $0x3d8] sm:$0xff]  ;;  %v1273_v26 = vpack.c.bf16 %v558_v19, %v555_v18  ;;  %v582_v63 = vld [vmem:[#allocation8 + $0x140] sm:$0xff] }
  0x7a   :  { %1228 = vmatpush1.bf16.msra.mxu1 %v1227_v8  ;;  %v181_v8 = vld [vmem:[#allocation5 + $0x350] sm:$0xff]  ;;  %v557_v28 = vld [vmem:[#allocation8 + $0x78] sm:$0xff]  ;;  %v598_v6 = vld [vmem:[#allocation8 + $0x1c0] sm:$0xff] }
  0x7b   :  { %1230 = vmatprep.subr.bf16.mxu1 %v1229_v9  ;;  %1176 = vmatpush1.bf16.msra.mxu0 %v1175_v12  ;;  %v185_v9 = vld [vmem:[#allocation5 + $0x370] sm:$0xff]  ;;  %v194_v12 = vld [vmem:[#allocation5 + $0x3b8] sm:$0xff]  ;;  %v594_v19 = vld [vmem:[#allocation8 + $0x1a0] sm:$0xff] }
  0x7c   :  { %1178 = vmatprep.subr.bf16.mxu0 %v1177_v15  ;;  %v548_v15 = vld [vmem:[#allocation8 + $0x30] sm:$0xff]  ;;  %v1251_v17 = vpack.c.bf16 %v185_v9, %v181_v8  ;;  %v561_v30 = vld [vmem:[#allocation8 + $0x98] sm:$0xff]  ;;  %v563_v40 = vld [vmem:[#allocation8 + $0xa8] sm:$0xff] }
  0x7d   :  { %v1271_v25 = vpack.c.bf16 %v551_v16, %v548_v15  ;;  %v201_v34 = vld [vmem:[#allocation5 + $0x3f0] sm:$0xff]  ;;  %v206_v35 = vld [vmem:[#allocation5 + $0x418] sm:$0xff]  ;;  %v1277_v38 = vpack.c.bf16 %v564_v31, %v561_v30  ;;  %v578_v9 = vld [vmem:[#allocation8 + $0x120] sm:$0xff] }
  0x7e   :  { %1232 = vmatpush1.bf16.msra.mxu1 %v1231_v20  ;;  %v1253_v20 = vpack.c.bf16 %v194_v12, %v190_v11  ;;  %v567_v42 = vld [vmem:[#allocation8 + $0xc8] sm:$0xff]  ;;  %v569_v51 = vld [vmem:[#allocation8 + $0xd8] sm:$0xff]  ;;  %v576_v54 = vld [vmem:[#allocation8 + $0x110] sm:$0xff] }
  0x7f   :  { %1234 = vmatprep.subr.bf16.mxu1 %v1233_v21  ;;  %1180 = vmatpush1.bf16.msra.mxu0 %v1179_v24  ;;  %v189_v21 = vld [vmem:[#allocation5 + $0x390] sm:$0xff]  ;;  %v202_v24 = vld [vmem:[#allocation5 + $0x3f8] sm:$0xff]  ;;  %v1283_v56 = vpack.c.bf16 %v569_v51, %v566_v50 }
  0x80   :  { %1182 = vmatprep.subr.bf16.mxu0 %v1181_v27  ;;  %v554_v27 = vld [vmem:[#allocation8 + $0x60] sm:$0xff]  ;;  %v1255_v29 = vpack.c.bf16 %v193_v22, %v189_v21  ;;  %v209_v47 = vld [vmem:[#allocation5 + $0x430] sm:$0xff]  ;;  %v573_v53 = vld [vmem:[#allocation8 + $0xf8] sm:$0xff] }
  0x81   :  { %v1275_v37 = vpack.c.bf16 %v557_v28, %v554_v27  ;;  %v592_v57 = vld [vmem:[#allocation8 + $0x190] sm:$0xff]  ;;  %v1285_v59 = vpack.c.bf16 %v576_v54, %v573_v53  ;;  %v579_v62 = vld [vmem:[#allocation8 + $0x128] sm:$0xff]  ;;  %v585_v11 = vld [vmem:[#allocation8 + $0x158] sm:$0xff] }
  0x82   :  { %1236 = vmatpush1.bf16.msra.mxu1 %v1235_v32  ;;  %v1257_v32 = vpack.c.bf16 %v202_v24, %v198_v23  ;;  %v572_v60 = vld [vmem:[#allocation8 + $0xf0] sm:$0xff]  ;;  %v1289_v8 = vpack.c.bf16 %v582_v63, %v579_v62  ;;  %v591_v18 = vld [vmem:[#allocation8 + $0x188] sm:$0xff]  ;;  %v590_v22 = vld [vmem:[#allocation8 + $0x180] sm:$0xff] }
  0x83   :  { %1238 = vmatprep.subr.bf16.mxu1 %v1237_v33  ;;  %1184 = vmatpush1.bf16.msra.mxu0 %v1183_v36  ;;  %v197_v33 = vld [vmem:[#allocation5 + $0x3d0] sm:$0xff]  ;;  %v210_v36 = vld [vmem:[#allocation5 + $0x438] sm:$0xff]  ;;  %v1297_v21 = vpack.c.bf16 %v594_v19, %v591_v18  ;;  %v562_v54 = vld [vmem:[#allocation8 + $0xa0] sm:$0xff] }
  0x84   :  { %1186 = vmatprep.subr.bf16.mxu0 %v1185_v39  ;;  %v560_v39 = vld [vmem:[#allocation8 + $0x90] sm:$0xff]  ;;  %v1259_v41 = vpack.c.bf16 %v201_v34, %v197_v33  ;;  %v593_v23 = vld [vmem:[#allocation8 + $0x198] sm:$0xff]  ;;  %v599_v28 = vld [vmem:[#allocation8 + $0x1c8] sm:$0xff] }
  0x85   :  { %v1279_v48 = vpack.c.bf16 %v563_v40, %v560_v39  ;;  %v544_v3 = vld [vmem:[#allocation8 + $0x10] sm:$0xff]  ;;  %v597_v24 = vld [vmem:[#allocation8 + $0x1b8] sm:$0xff]  ;;  %v606_v33 = vld [vmem:[#allocation8 + $0x200] sm:$0xff] }
  0x86   :  { %1240 = vmatpush1.bf16.msra.mxu1 %v1239_v44  ;;  %v1261_v44 = vpack.c.bf16 %v210_v36, %v206_v35  ;;  %v584_v16 = vld [vmem:[#allocation8 + $0x150] sm:$0xff]  ;;  %v553_v31 = vld [vmem:[#allocation8 + $0x58] sm:$0xff]  ;;  %v619_v62 = vld [vmem:[#allocation8 + $0x268] sm:$0xff] }
  0x87   :  { %1242 = vmatprep.subr.bf16.mxu1 %v1241_v46  ;;  %1188 = vmatpush1.bf16.msra.mxu0 %v1187_v49  ;;  %v205_v46 = vld [vmem:[#allocation5 + $0x410] sm:$0xff]  ;;  %v1281_v49 = vpack.c.bf16 %v570_v43, %v567_v42  ;;  %v605_v40 = vld [vmem:[#allocation8 + $0x1f8] sm:$0xff]  ;;  %v614_v63 = vld [vmem:[#allocation8 + $0x240] sm:$0xff] }
  0x88   :  { %1190 = vmatprep.subr.bf16.mxu0 %v1189_v52  ;;  %v1263_v52 = vpack.c.bf16 %v209_v47, %v205_v46  ;;  %v596_v27 = vld [vmem:[#allocation8 + $0x1b0] sm:$0xff]  ;;  %v559_v42 = vld [vmem:[#allocation8 + $0x88] sm:$0xff]  ;;  %v609_v46 = vld [vmem:[#allocation8 + $0x218] sm:$0xff] }
  0x89   :  { %v1303_v30 = vpack.c.bf16 %v599_v28, %v596_v27  ;;  %v604_v36 = vld [vmem:[#allocation8 + $0x1f0] sm:$0xff]  ;;  %v613_v50 = vld [vmem:[#allocation8 + $0x238] sm:$0xff]  ;;  %v627_v18 = vld [vmem:[#allocation8 + $0x2a8] sm:$0xff] }
  0x8a   :  { %1244 = vmatpush1.bf16.msra.mxu1 %v1243_v55  ;;  %v214_v55 = vld [vmem:[#allocation5 + $0x458] sm:$0xf]  ;;  %v630_v19 = vld [vmem:[#allocation8 + $0x2c0] sm:$0xff]  ;;  %v583_v27 = vld [vmem:[#allocation8 + $0x148] sm:$0xff] }
  0x8b   :  { %1246 = vmatprep.subr.bf16.mxu1 %v1245_v58  ;;  %1192 = vmatpush1.bf16.msra.mxu0 %v1191_v61  ;;  %v595_v58 = vld [vmem:[#allocation8 + $0x1a8] sm:$0xff]  ;;  %v612_v47 = vld [vmem:[#allocation8 + $0x230] sm:$0xff]  ;;  %v633_v28 = vld [vmem:[#allocation8 + $0x2d8] sm:$0xff] }
  0x8c   :  { %1266 = vmatprep.subr.bf16.mxu0 %v1265_v1  ;;  %v575_v61 = vld [vmem:[#allocation8 + $0x108] sm:$0xff]  ;;  %v1393_v2 = vpack.c.bf16 %v595_v58, %v592_v57  ;;  %v608_v51 = vld [vmem:[#allocation8 + $0x210] sm:$0xff] }
  0x8d   :  { %v213_v1 = vld [vmem:[#allocation5 + $0x450] sm:$0xf]  ;;  %v1287_v5 = vpack.c.bf16 %v575_v61, %v572_v60  ;;  %v616_v60 = vld [vmem:[#allocation8 + $0x250] sm:$0xff] }
  0x8e   :  { %1248 = vmatpush1.bf16.msra.mxu1 %v1247_v4  ;;  %319 = vmatmul.mubr.f32.vlgmr.msra.gmra.mrb[0].mxu0 %v1700_v10  ;;  %v547_v4 = vld [vmem:[#allocation8 + $0x28] sm:$0xff] }
  0x8f   :  { %1250 = vmatprep.subr.bf16.mxu1 %v1249_v7  ;;  %1268 = vmatpush1.bf16.msra.mxu0 %v1267_v13  ;;  %v601_v7 = vld [vmem:[#allocation8 + $0x1d8] sm:$0xff]  ;;  %v1395_v12 = vpack.c.bf16 %v547_v4, %v544_v3  ;;  %v615_v58 = vld [vmem:[#allocation8 + $0x248] sm:$0xff]  ;;  %v568_v4 = vld [vmem:[#allocation8 + $0xd0] sm:$0xff] }
  0x90   :  { %1270 = vmatprep.subr.bf16.mxu0 %v1269_v14  ;;  %v1397_v13 = vpack.c.bf16 %v601_v7, %v598_v6  ;;  %v621_v7 = vld [vmem:[#allocation8 + $0x278] sm:$0xff] }
  0x92   :  { %1252 = vmatpush1.bf16.msra.mxu1 %v1251_v17  ;;  %v587_v17 = vld [vmem:[#allocation8 + $0x168] sm:$0xff] }
  0x93   :  { %1254 = vmatprep.subr.bf16.mxu1 %v1253_v20  ;;  %1272 = vmatpush1.bf16.msra.mxu0 %v1271_v25  ;;  %v1295_v20 = vpack.c.bf16 %v587_v17, %v584_v16  ;;  %v600_v25 = vld [vmem:[#allocation8 + $0x1d0] sm:$0xff]  ;;  %v577_v16 = vld [vmem:[#allocation8 + $0x118] sm:$0xff] }
  0x94   :  { %1274 = vmatprep.subr.bf16.mxu0 %v1273_v26  ;;  %v1299_v26 = vpack.c.bf16 %v593_v23, %v590_v22  ;;  %v631_v22 = vld [vmem:[#allocation8 + $0x2c8] sm:$0xff]  ;;  %v626_v23 = vld [vmem:[#allocation8 + $0x2a0] sm:$0xff] }
  0x96   :  { %1256 = vmatpush1.bf16.msra.mxu1 %v1255_v29  ;;  %v550_v29 = vld [vmem:[#allocation8 + $0x40] sm:$0xff] }
  0x97   :  { %1258 = vmatprep.subr.bf16.mxu1 %v1257_v32  ;;  %1276 = vmatpush1.bf16.msra.mxu0 %v1275_v37  ;;  %v603_v32 = vld [vmem:[#allocation8 + $0x1e8] sm:$0xff]  ;;  %v1399_v34 = vpack.c.bf16 %v553_v31, %v550_v29  ;;  %v634_v31 = vld [vmem:[#allocation8 + $0x2e0] sm:$0xff] }
  0x98   :  { %1278 = vmatprep.subr.bf16.mxu0 %v1277_v38  ;;  %v1305_v35 = vpack.c.bf16 %v606_v33, %v603_v32  ;;  %v607_v37 = vld [vmem:[#allocation8 + $0x208] sm:$0xff]  ;;  %v602_v38 = vld [vmem:[#allocation8 + $0x1e0] sm:$0xff]  ;;  %v637_v32 = vld [vmem:[#allocation8 + $0x2f8] sm:$0xff] }
  0x99   :  { %v1401_v39 = vpack.c.bf16 %v607_v37, %v604_v36  ;;  %v1307_v43 = vpack.c.bf16 %v605_v40, %v602_v38  ;;  %v635_v36 = vld [vmem:[#allocation8 + $0x2e8] sm:$0xff]  ;;  %v586_v37 = vld [vmem:[#allocation8 + $0x160] sm:$0xff] }
  0x9a   :  { %1260 = vmatpush1.bf16.msra.mxu1 %v1259_v41  ;;  %v556_v41 = vld [vmem:[#allocation8 + $0x70] sm:$0xff] }
  0x9b   :  { %1262 = vmatprep.subr.bf16.mxu1 %v1261_v44  ;;  %1280 = vmatpush1.bf16.msra.mxu0 %v1279_v48  ;;  %v1403_v44 = vpack.c.bf16 %v559_v42, %v556_v41  ;;  %v610_v48 = vld [vmem:[#allocation8 + $0x220] sm:$0xff]  ;;  %v639_v41 = vld [vmem:[#allocation8 + $0x308] sm:$0xff] }
  0x9c   :  { %1282 = vmatprep.subr.bf16.mxu0 %v1281_v49  ;;  %v1309_v49 = vpack.c.bf16 %v612_v47, %v609_v46  ;;  %v1405_v53 = vpack.c.bf16 %v613_v50, %v610_v48  ;;  %v642_v42 = vld [vmem:[#allocation8 + $0x320] sm:$0xff]  ;;  %v691_v46 = vld [vmem:[#allocation8 + $0x4a8] sm:$0xff]  ;;  %v217_v50 = vlaneseq }
  0x9d   :  { %461 = vmatmul.mubr.f32.vlgmr.msra.gmra.mrb[2].mxu1 %v1700_v10  ;;  %v581_v10 = vld [vmem:[#allocation8 + $0x138] sm:$0xff] }
  0x9e   :  { %1264 = vmatpush1.bf16.msra.mxu1 %v1263_v52  ;;  %531 = vmatprep.mubr.f32.mxu1 %v1613_v0  ;;  %v588_v0 = vld [vmem:[#allocation8 + $0x170] sm:$0xff]  ;;  %v1291_v14 = vpack.c.bf16 %v581_v10, %v578_v9  ;;  %v611_v52 = vld [vmem:[#allocation8 + $0x228] sm:$0xff]  ;;  %v622_v9 = vld [vmem:[#allocation8 + $0x280] sm:$0xff] }
  0x9f   :  { %1056 = vmatprep.subr.msk.mxu1 %vm241_vm0, %v214_v55  ;;  %1284 = vmatpush1.bf16.msra.mxu0 %v1283_v56  ;;  %v1293_v15 = vpack.c.bf16 %v588_v0, %v585_v11  ;;  %v565_v55 = vld [vmem:[#allocation8 + $0xb8] sm:$0xff]  ;;  %v1311_v56 = vpack.c.bf16 %v611_v52, %v608_v51  ;;  %v620_v0 = vld [vmem:[#allocation8 + $0x270] sm:$0xff]  ;;  %v1709_v51 = vshrl.u32 %v217_v50, 7  ;;  %v715_v50 = vld [vmem:[#allocation8 + $0x568] sm:$0xff] }
  0xa0   :  { %1286 = vmatprep.subr.bf16.mxu0 %v1285_v59  ;;  %v1407_v57 = vpack.c.bf16 %v565_v55, %v562_v54  ;;  %v618_v59 = vld [vmem:[#allocation8 + $0x260] sm:$0xff]  ;;  %v625_v11 = vld [vmem:[#allocation8 + $0x298] sm:$0xff] }
  0xa1   :  { %v1313_v61 = vpack.c.bf16 %v618_v59, %v615_v58  ;;  %v219_v52 = vsub.s32 0, %v1709_v51  ;;  %v223_v54 = vsub.s32 1, %v1709_v51 }
  0xa2   :  { %1057 = vmatpush1.msk.msra.mxu1 %vm241_vm0, %v213_v1  ;;  %v617_v1 = vld [vmem:[#allocation8 + $0x258] sm:$0xff] }
  0xa3   :  { %1394 = vmatprep.subr.bf16.mxu1 %v1393_v2  ;;  %1288 = vmatpush1.bf16.msra.mxu0 %v1287_v5  ;;  %v1409_v2 = vpack.c.bf16 %v619_v62, %v616_v60  ;;  %v1315_v3 = vpack.c.bf16 %v617_v1, %v614_v63  ;;  %v571_v5 = vld [vmem:[#allocation8 + $0xe8] sm:$0xff]  ;;  %v638_v63 = vld [vmem:[#allocation8 + $0x300] sm:$0xff]  ;;  %v641_v1 = vld [vmem:[#allocation8 + $0x318] sm:$0xff] }
  0xa4   :  { %1290 = vmatprep.subr.bf16.mxu0 %v1289_v8  ;;  %v1411_v6 = vpack.c.bf16 %v571_v5, %v568_v4  ;;  %v624_v8 = vld [vmem:[#allocation8 + $0x290] sm:$0xff]  ;;  %v645_v4 = vld [vmem:[#allocation8 + $0x338] sm:$0xff] }
  0xa5   :  { %1058 = vmatmul.mubr.msk.f32.vlgmr.msra.gmra.mrb[2].mxu1 %vm237_vm1, %v1695_v45  ;;  %v1301_v45 = vpack.c.bf16 %v600_v25, %v597_v24  ;;  %v1317_v10 = vpack.c.bf16 %v624_v8, %v621_v7  ;;  %v629_v24 = vld [vmem:[#allocation8 + $0x2b8] sm:$0xff]  ;;  %v648_v5 = vld [vmem:[#allocation8 + $0x350] sm:$0xff]  ;;  %v1331_v8 = vpack.c.bf16 %v641_v1, %v638_v63 }
  0xa6   :  { %1396 = vmatpush3.bf16.msra.mxu1 %v1395_v12  ;;  %v623_v12 = vld [vmem:[#allocation8 + $0x288] sm:$0xff]  ;;  %v697_v7 = vld [vmem:[#allocation8 + $0x4d8] sm:$0xff] }
  0xa7   :  { %1398 = vmatprep.subr.bf16.mxu1 %v1397_v13  ;;  %1292 = vmatpush1.bf16.msra.mxu0 %v1291_v14  ;;  %v1413_v13 = vpack.c.bf16 %v625_v11, %v622_v9  ;;  %v1319_v14 = vpack.c.bf16 %v623_v12, %v620_v0  ;;  %v647_v11 = vld [vmem:[#allocation8 + $0x348] sm:$0xff]  ;;  %v1333_v12 = vpack.c.bf16 %v648_v5, %v645_v4  ;;  %v669_v63 = vld [vmem:[#allocation8 + $0x3f8] sm:$0xff] }
  0xa8   :  { %1294 = vmatprep.subr.bf16.mxu0 %v1293_v15  ;;  %v574_v15 = vld [vmem:[#allocation8 + $0x100] sm:$0xff]  ;;  %v721_v4 = vld [vmem:[#allocation8 + $0x598] sm:$0xff] }
  0xa9   :  { %v1415_v17 = vpack.c.bf16 %v577_v16, %v574_v15  ;;  %v649_v15 = vld [vmem:[#allocation8 + $0x358] sm:$0xff]  ;;  %v651_v16 = vld [vmem:[#allocation8 + $0x368] sm:$0xff] }
  0xaa   :  { %1400 = vmatpush3.bf16.msra.mxu1 %v1399_v34  ;;  %v1421_v34 = vpack.c.bf16 %v637_v32, %v634_v31  ;;  %v660_v31 = vld [vmem:[#allocation8 + $0x3b0] sm:$0xff]  ;;  %v706_v32 = vld [vmem:[#allocation8 + $0x520] sm:$0xff] }
  0xab   :  { %1296 = vmatpush1.bf16.msra.mxu0 %v1295_v20  ;;  %1402 = vmatprep.subr.bf16.mxu1 %v1401_v39  ;;  %v628_v20 = vld [vmem:[#allocation8 + $0x2b0] sm:$0xff]  ;;  %v589_v39 = vld [vmem:[#allocation8 + $0x178] sm:$0xff] }
  0xac   :  { %1298 = vmatprep.subr.bf16.mxu0 %v1297_v21  ;;  %v1321_v21 = vpack.c.bf16 %v630_v19, %v627_v18  ;;  %v1417_v25 = vpack.c.bf16 %v631_v22, %v628_v20  ;;  %v1423_v40 = vpack.c.bf16 %v589_v39, %v586_v37  ;;  %v654_v19 = vld [vmem:[#allocation8 + $0x380] sm:$0xff]  ;;  %v700_v20 = vld [vmem:[#allocation8 + $0x4f0] sm:$0xff] }
  0xad   :  { %v656_v37 = vld [vmem:[#allocation8 + $0x390] sm:$0xff] }
  0xae   :  { %1404 = vmatpush3.bf16.msra.mxu1 %v1403_v44  ;;  %v1329_v44 = vpack.c.bf16 %v642_v42, %v639_v41  ;;  %v658_v42 = vld [vmem:[#allocation8 + $0x3a0] sm:$0xff] }
  0xaf   :  { %1300 = vmatpush1.bf16.msra.mxu0 %v1299_v26  ;;  %1406 = vmatprep.subr.bf16.mxu1 %v1405_v53  ;;  %v1323_v26 = vpack.c.bf16 %v629_v24, %v626_v23  ;;  %v1712_v53 = vld [vmem:[#allocation7] sm:$0xf]  ;;  %v650_v24 = vld [vmem:[#allocation8 + $0x360] sm:$0xff] }
  0xb0   :  { %1302 = vmatprep.subr.bf16.mxu0 %v1301_v45  ;;  %v580_v45 = vld [vmem:[#allocation8 + $0x130] sm:$0xff]  ;;  %v220_v55 = vrot.slane %v1712_v53, %v219_v52 }
  0xb1   :  { %v1419_v29 = vpack.c.bf16 %v583_v27, %v580_v45  ;;  %v652_v27 = vld [vmem:[#allocation8 + $0x370] sm:$0xff] }
  0xb2   :  { %1408 = vmatpush3.bf16.msra.mxu1 %v1407_v57 }
  0xb3   :  { %1304 = vmatpush1.bf16.msra.mxu0 %v1303_v30  ;;  %1410 = vmatprep.subr.bf16.mxu1 %v1409_v2  ;;  %v636_v30 = vld [vmem:[#allocation8 + $0x2f0] sm:$0xff] }
  0xb4   :  { %1306 = vmatprep.subr.bf16.mxu0 %v1305_v35  ;;  %v1325_v33 = vpack.c.bf16 %v636_v30, %v633_v28  ;;  %v632_v35 = vld [vmem:[#allocation8 + $0x2d0] sm:$0xff]  ;;  %v655_v28 = vld [vmem:[#allocation8 + $0x388] sm:$0xff] }
  0xb5   :  { %v1327_v38 = vpack.c.bf16 %v635_v36, %v632_v35  ;;  %v640_v2 = vld [vmem:[#allocation8 + $0x310] sm:$0xff]  ;;  %v1435_v36 = vpack.c.bf16 %v655_v28, %v652_v27  ;;  %v733_v27 = vld [vmem:[#allocation8 + $0x5f8] sm:$0xff] }
  0xb6   :  { %1412 = vmatpush3.bf16.msra.mxu1 %v1411_v6  ;;  %v694_v6 = vld [vmem:[#allocation8 + $0x4c0] sm:$0xff] }
  0xb7   :  { %1308 = vmatpush1.bf16.msra.mxu0 %v1307_v43  ;;  %1414 = vmatprep.subr.bf16.mxu1 %v1413_v13  ;;  %v688_v43 = vld [vmem:[#allocation8 + $0x490] sm:$0xff]  ;;  %v1429_v13 = vpack.c.bf16 %v697_v7, %v694_v6 }
  0xb8   :  { %1310 = vmatprep.subr.bf16.mxu0 %v1309_v49  ;;  %v1425_v47 = vpack.c.bf16 %v691_v46, %v688_v43  ;;  %v661_v43 = vld [vmem:[#allocation8 + $0x3b8] sm:$0xff]  ;;  %v668_v7 = vld [vmem:[#allocation8 + $0x3f0] sm:$0xff] }
  0xba   :  { %1416 = vmatpush3.bf16.msra.mxu1 %v1415_v17  ;;  %v231_v17 = vsub.s32 3, %v1709_v51 }
  0xbb   :  { %1312 = vmatpush1.bf16.msra.mxu0 %v1311_v56  ;;  %1418 = vmatprep.subr.bf16.mxu1 %v1417_v25  ;;  %v224_v56 = vrot.slane %v1712_v53, %v223_v54  ;;  %v653_v25 = vld [vmem:[#allocation8 + $0x378] sm:$0xff] }
  0xbc   :  { %1314 = vmatprep.subr.bf16.mxu0 %v1313_v61  ;;  %v232_v30 = vrot.slane %v1712_v53, %v231_v17  ;;  %v1339_v35 = vpack.c.bf16 %v653_v25, %v650_v24  ;;  %v679_v24 = vld [vmem:[#allocation8 + $0x448] sm:$0xff]  ;;  %v681_v25 = vld [vmem:[#allocation8 + $0x458] sm:$0xff] }
  0xbe   :  { %1420 = vmatpush3.bf16.msra.mxu1 %v1419_v29  ;;  %v657_v29 = vld [vmem:[#allocation8 + $0x398] sm:$0xff] }
  0xbf   :  { %1316 = vmatpush1.bf16.msra.mxu0 %v1315_v3  ;;  %1422 = vmatprep.subr.bf16.mxu1 %v1421_v34  ;;  %v643_v3 = vld [vmem:[#allocation8 + $0x328] sm:$0xff] }
  0xc0   :  { %1318 = vmatprep.subr.bf16.mxu0 %v1317_v10  ;;  %v1427_v9 = vpack.c.bf16 %v643_v3, %v640_v2  ;;  %v644_v10 = vld [vmem:[#allocation8 + $0x330] sm:$0xff]  ;;  %v718_v3 = vld [vmem:[#allocation8 + $0x580] sm:$0xff] }
  0xc1   :  { %v1335_v22 = vpack.c.bf16 %v647_v11, %v644_v10  ;;  %v672_v2 = vld [vmem:[#allocation8 + $0x410] sm:$0xff]  ;;  %v1445_v10 = vpack.c.bf16 %v721_v4, %v718_v3  ;;  %v670_v11 = vld [vmem:[#allocation8 + $0x400] sm:$0xff]  ;;  %v707_v4 = vld [vmem:[#allocation8 + $0x528] sm:$0xff] }
  0xc2   :  { %1424 = vmatpush3.bf16.msra.mxu1 %v1423_v40  ;;  %v1341_v40 = vpack.c.bf16 %v660_v31, %v657_v29  ;;  %v704_v3 = vld [vmem:[#allocation8 + $0x510] sm:$0xff] }
  0xc3   :  { %1320 = vmatpush1.bf16.msra.mxu0 %v1319_v14  ;;  %1426 = vmatprep.subr.bf16.mxu1 %v1425_v47  ;;  %v646_v14 = vld [vmem:[#allocation8 + $0x340] sm:$0xff]  ;;  %v227_v47 = vsub.s32 2, %v1709_v51 }
  0xc4   :  { %1322 = vmatprep.subr.bf16.mxu0 %v1321_v21  ;;  %v703_v21 = vld [vmem:[#allocation8 + $0x508] sm:$0xff]  ;;  %v1431_v23 = vpack.c.bf16 %v649_v15, %v646_v14  ;;  %v678_v14 = vld [vmem:[#allocation8 + $0x440] sm:$0xff]  ;;  %v724_v15 = vld [vmem:[#allocation8 + $0x5b0] sm:$0xff] }
  0xc5   :  { %v1433_v45 = vpack.c.bf16 %v703_v21, %v700_v20  ;;  %v228_v1 = vrot.slane %v1712_v53, %v227_v47  ;;  %v727_v53 = vld [vmem:[#allocation8 + $0x5c8] sm:$0xff] }
  0xc7   :  { %1324 = vmatpush1.bf16.msra.mxu0 %v1323_v26  ;;  %v1337_v26 = vpack.c.bf16 %v654_v19, %v651_v16  ;;  %v677_v19 = vld [vmem:[#allocation8 + $0x438] sm:$0xff] }
  0xc8   :  { %1326 = vmatprep.subr.bf16.mxu0 %v1325_v33  ;;  %v709_v33 = vld [vmem:[#allocation8 + $0x538] sm:$0xff] }
  0xc9   :  { %v1437_v41 = vpack.c.bf16 %v709_v33, %v706_v32  ;;  %v683_v33 = vld [vmem:[#allocation8 + $0x468] sm:$0xff] }
  0xcb   :  { %1328 = vmatpush1.bf16.msra.mxu0 %v1327_v38  ;;  %v659_v38 = vld [vmem:[#allocation8 + $0x3a8] sm:$0xff] }
  0xcc   :  { %1330 = vmatprep.subr.bf16.mxu0 %v1329_v44  ;;  %v663_v44 = vld [vmem:[#allocation8 + $0x3c8] sm:$0xff] }
 0x130   :  { %v391_v48 = vpop.f32.mrb[0].mxu1 }
 0x131   :  { %v393_v49 = vpop.f32.mrb[1].mxu1 }
 0x161   :  { %v320_v57 = vpop.f32.mrb[0].mxu0 }
 0x162   :  { %v321_v58 = vadd.f32 %v320_v57, %v220_v55  ;;  %v322_v59 = vpop.f32.mrb[1].mxu0  ;;  %v1343_v55 = vpack.c.bf16 %v659_v38, %v656_v37  ;;  %v662_v57 = vld [vmem:[#allocation8 + $0x3c0] sm:$0xff] }
 0x163   :  { %v323_v60 = vadd.f32 %v322_v59, %v224_v56  ;;  %v1439_v56 = vpack.c.bf16 %v661_v43, %v658_v42  ;;  %v690_v37 = vld [vmem:[#allocation8 + $0x4a0] sm:$0xff]  ;;  %v689_v42 = vld [vmem:[#allocation8 + $0x498] sm:$0xff] }
 0x164   :  { %v392_v61 = vadd.f32 %v391_v48, %v321_v58  ;;  %v666_v48 = vld [vmem:[#allocation8 + $0x3e0] sm:$0xff]  ;;  %v665_v58 = vld [vmem:[#allocation8 + $0x3d8] sm:$0xff] }
 0x165   :  { %v394_v62 = vadd.f32 %v393_v49, %v323_v60  ;;  %v712_v49 = vld [vmem:[#allocation8 + $0x550] sm:$0xff]  ;;  %v1345_v59 = vpack.c.bf16 %v666_v48, %v663_v44  ;;  %v1347_v5 = vpack.c.bf16 %v665_v58, %v662_v57  ;;  %v693_v43 = vld [vmem:[#allocation8 + $0x4b8] sm:$0xff]  ;;  %v702_v57 = vld [vmem:[#allocation8 + $0x500] sm:$0xff] }
 0x166   :  { %v1441_v60 = vpack.c.bf16 %v715_v50, %v712_v49  ;;  %v696_v44 = vld [vmem:[#allocation8 + $0x4d0] sm:$0xff] }
 0x167   :  { %1479 = vtanh.f32 %v394_v62  ;;  %v667_v62 = vld [vmem:[#allocation8 + $0x3e8] sm:$0xff]  ;;  %v1365_v49 = vpack.c.bf16 %v696_v44, %v693_v43  ;;  %v692_v50 = vld [vmem:[#allocation8 + $0x4b0] sm:$0xff] }
 0x168   :  { %1481 = vtanh.f32 %v392_v61  ;;  %v664_v61 = vld [vmem:[#allocation8 + $0x3d0] sm:$0xff] }
 0x169   :  { %v1443_v6 = vpack.c.bf16 %v667_v62, %v664_v61  ;;  %v701_v61 = vld [vmem:[#allocation8 + $0x4f8] sm:$0xff] }
 0x16a   :  { %v705_v62 = vld [vmem:[#allocation8 + $0x518] sm:$0xff] }
 0x171   :  { %v1480_v0 = vpop.eup %1479 }
 0x172   :  { %v1482_v18 = vpop.eup %1481  ;;  %815 = vmatprep.mubr.f32.mxu0 %v1480_v0  ;;  %957 = vmatprep.mubr.f32.mxu1 %v1480_v0  ;;  %v673_v0 = vld [vmem:[#allocation8 + $0x418] sm:$0xff] }
 0x173   :  { %816 = vmatmul.mubr.f32.vlgmr.msra.gmra.mrb[2].mxu0 %v1482_v18  ;;  %958 = vmatmul.mubr.f32.vlgmr.msra.gmra.mrb[4].mxu1 %v1482_v18  ;;  %v1447_v17 = vpack.c.bf16 %v673_v0, %v670_v11  ;;  %v674_v18 = vld [vmem:[#allocation8 + $0x420] sm:$0xff]  ;;  %v717_v11 = vld [vmem:[#allocation8 + $0x578] sm:$0xff]  ;;  %v720_v0 = vld [vmem:[#allocation8 + $0x590] sm:$0xff] }
 0x174   :  { %1332 = vmatpush1.bf16.msra.mxu0 %v1331_v8  ;;  %1428 = vmatpush3.bf16.msra.mxu1 %v1427_v9  ;;  %v671_v8 = vld [vmem:[#allocation8 + $0x408] sm:$0xff]  ;;  %v1349_v9 = vpack.c.bf16 %v672_v2, %v669_v63  ;;  %v1355_v28 = vpack.c.bf16 %v677_v19, %v674_v18  ;;  %v708_v63 = vld [vmem:[#allocation8 + $0x530] sm:$0xff]  ;;  %v722_v19 = vld [vmem:[#allocation8 + $0x5a0] sm:$0xff] }
 0x175   :  { %1334 = vmatprep.subr.bf16.mxu0 %v1333_v12  ;;  %1430 = vmatprep.subr.bf16.mxu1 %v1429_v13  ;;  %v675_v12 = vld [vmem:[#allocation8 + $0x428] sm:$0xff]  ;;  %v1351_v16 = vpack.c.bf16 %v671_v8, %v668_v7  ;;  %v1373_v2 = vpack.c.bf16 %v708_v63, %v705_v62  ;;  %v1375_v7 = vpack.c.bf16 %v707_v4, %v704_v3 }
 0x176   :  { %v1353_v21 = vpack.c.bf16 %v678_v14, %v675_v12  ;;  %v716_v14 = vld [vmem:[#allocation8 + $0x570] sm:$0xff] }
 0x178   :  { %v533_v34 = vpop.f32.mrb[2].mxu1  ;;  %1336 = vmatpush1.bf16.msra.mxu0 %v1335_v22  ;;  %1432 = vmatpush3.bf16.msra.mxu1 %v1431_v23  ;;  %v1449_v22 = vpack.c.bf16 %v727_v53, %v724_v15  ;;  %v676_v23 = vld [vmem:[#allocation8 + $0x430] sm:$0xff]  ;;  %v719_v15 = vld [vmem:[#allocation8 + $0x588] sm:$0xff] }
 0x179   :  { %v535_v39 = vpop.f32.mrb[3].mxu1  ;;  %1338 = vmatprep.subr.bf16.mxu0 %v1337_v26  ;;  %1434 = vmatprep.subr.bf16.mxu1 %v1433_v45  ;;  %v1461_v13 = vadd.f32 %v533_v34, %v228_v1  ;;  %v684_v26 = vld [vmem:[#allocation8 + $0x470] sm:$0xff]  ;;  %v730_v45 = vld [vmem:[#allocation8 + $0x5e0] sm:$0xff]  ;;  %v1451_v29 = vpack.c.bf16 %v679_v24, %v676_v23  ;;  %v723_v53 = vld [vmem:[#allocation8 + $0x5a8] sm:$0xff] }
 0x17a   :  { %v1462_v46 = vadd.f32 %v535_v39, %v232_v30  ;;  %v680_v30 = vld [vmem:[#allocation8 + $0x450] sm:$0xff]  ;;  %v1357_v31 = vpack.c.bf16 %v684_v26, %v681_v25  ;;  %v1453_v32 = vpack.c.bf16 %v733_v27, %v730_v45  ;;  %v682_v34 = vld [vmem:[#allocation8 + $0x460] sm:$0xff]  ;;  %v731_v26 = vld [vmem:[#allocation8 + $0x5e8] sm:$0xff] }
 0x17b   :  { %v1359_v38 = vpack.c.bf16 %v683_v33, %v680_v30  ;;  %v728_v25 = vld [vmem:[#allocation8 + $0x5d0] sm:$0xff]  ;;  %v734_v30 = vld [vmem:[%s1752_s4] sm:$0x7]  ;;  %s1575_s4 = scalar_lea.vmem %s1043_s18, 384 }
 0x17c   :  { %1483 = vtanh.f32 %v1462_v46  ;;  %1340 = vmatpush1.bf16.msra.mxu0 %v1339_v35  ;;  %1436 = vmatpush3.bf16.msra.mxu1 %v1435_v36  ;;  %v685_v35 = vld [vmem:[#allocation8 + $0x478] sm:$0xff]  ;;  %v687_v36 = vld [vmem:[#allocation8 + $0x488] sm:$0xff]  ;;  %v1391_v45 = vpack.c.bf16 %v731_v26, %v728_v25  ;;  %p1576_p4 = scmp.ne.s32.totalorder %s1043_s18, %s1575_s4  ;;  %p1581_p6 = scmp.lt.s32.totalorder %s1575_s4, %s1575_s4 }
 0x17d   :  { %1342 = vmatprep.subr.bf16.mxu0 %v1341_v40  ;;  %1438 = vmatprep.subr.bf16.mxu1 %v1437_v41  ;;  %1485 = vtanh.f32 %v1461_v13  ;;  %v1455_v39 = vpack.c.bf16 %v685_v35, %v682_v34  ;;  %v1361_v40 = vpack.c.bf16 %v690_v37, %v687_v36  ;;  %v686_v41 = vld [vmem:[#allocation8 + $0x480] sm:$0xff]  ;;  %v1381_v13 = vpack.c.bf16 %v720_v0, %v717_v11 }
 0x17e   :  { %v1363_v48 = vpack.c.bf16 %v689_v42, %v686_v41  ;;  %v739_v37 = vrot.slane %v734_v30, %v219_v52  ;;  %p1582_p7 = por %p1581_p6, %p1580_p5 }
 0x180   :  { %1344 = vmatpush1.bf16.msra.mxu0 %v1343_v55  ;;  %1440 = vmatpush3.bf16.msra.mxu1 %v1439_v56  ;;  %v695_v55 = vld [vmem:[#allocation8 + $0x4c8] sm:$0xff]  ;;  %p1583_p8 = pnand %p1582_p7, %p1576_p4 }
 0x181   :  { %1346 = vmatprep.subr.bf16.mxu0 %v1345_v59  ;;  %1442 = vmatprep.subr.bf16.mxu1 %v1441_v60  ;;  %v699_v56 = vld [vmem:[#allocation8 + $0x4e8] sm:$0xff]  ;;  %v1367_v58 = vpack.c.bf16 %v695_v55, %v692_v50  ;;  %v698_v60 = vld [vmem:[#allocation8 + $0x4e0] sm:$0xff] }
 0x182   :  { %v1369_v59 = vpack.c.bf16 %v702_v57, %v699_v56  ;;  %v1371_v1 = vpack.c.bf16 %v701_v61, %v698_v60 }
 0x184   :  { %1348 = vmatpush1.bf16.msra.mxu0 %v1347_v5  ;;  %1444 = vmatpush3.bf16.msra.mxu1 %v1443_v6  ;;  %v711_v5 = vld [vmem:[#allocation8 + $0x548] sm:$0xff]  ;;  %v714_v6 = vld [vmem:[#allocation8 + $0x560] sm:$0xff] }
 0x185   :  { %1350 = vmatprep.subr.bf16.mxu0 %v1349_v9  ;;  %1446 = vmatprep.subr.bf16.mxu1 %v1445_v10  ;;  %v1377_v8 = vpack.c.bf16 %v714_v6, %v711_v5  ;;  %v710_v9 = vld [vmem:[#allocation8 + $0x540] sm:$0xff]  ;;  %v713_v10 = vld [vmem:[#allocation8 + $0x558] sm:$0xff] }
 0x186   :  { %v1484_v20 = vpop.eup %1483  ;;  %v1379_v12 = vpack.c.bf16 %v713_v10, %v710_v9 }
 0x187   :  { %1027 = vmatprep.mubr.f32.mxu1 %v1484_v20  ;;  %886 = vmatprep.mubr.f32.mxu0 %v1484_v20  ;;  %v1486_v46 = vpop.eup %1485  ;;  %v725_v20 = vld [vmem:[#allocation8 + $0x5b8] sm:$0xff] }
 0x188   :  { %1352 = vmatpush1.bf16.msra.mxu0 %v1351_v16  ;;  %1448 = vmatpush3.bf16.msra.mxu1 %v1447_v17  ;;  %v726_v16 = vld [vmem:[#allocation8 + $0x5c0] sm:$0xff]  ;;  %v1383_v17 = vpack.c.bf16 %v719_v15, %v716_v14  ;;  %v1387_v23 = vpack.c.bf16 %v725_v20, %v722_v19 }
 0x189   :  { %1354 = vmatprep.subr.bf16.mxu0 %v1353_v21  ;;  %1450 = vmatprep.subr.bf16.mxu1 %v1449_v22  ;;  %v1385_v18 = vpack.c.bf16 %v726_v16, %v723_v53  ;;  %v729_v21 = vld [vmem:[#allocation8 + $0x5d8] sm:$0xff]  ;;  %v732_v22 = vld [vmem:[#allocation8 + $0x5f0] sm:$0xff] }
 0x18a   :  { %v1389_v24 = vpack.c.bf16 %v732_v22, %v729_v21 }
 0x18c   :  { %1356 = vmatpush1.bf16.msra.mxu0 %v1355_v28  ;;  %1452 = vmatpush3.bf16.msra.mxu1 %v1451_v29 }
 0x18d   :  { %1358 = vmatprep.subr.bf16.mxu0 %v1357_v31  ;;  %1454 = vmatprep.subr.bf16.mxu1 %v1453_v32  ;;  %v747_v31 = vrot.slane %v734_v30, %v227_v47 }
 0x190   :  { %1360 = vmatpush1.bf16.msra.mxu0 %v1359_v38  ;;  %1456 = vmatpush3.bf16.msra.mxu1 %v1455_v39  ;;  %v743_v38 = vrot.slane %v734_v30, %v223_v54 }
 0x191   :  { %1362 = vmatprep.subr.bf16.mxu0 %v1361_v40 }
 0x193   :  { %1028 = vmatmul.mubr.f32.vlgmr.msra.gmra.mrb[6].mxu1 %v1486_v46 }
 0x194   :  { %1364 = vmatpush1.bf16.msra.mxu0 %v1363_v48 }
 0x195   :  { %1366 = vmatprep.subr.bf16.mxu0 %v1365_v49 }
 0x198   :  { %1368 = vmatpush1.bf16.msra.mxu0 %v1367_v58 }
 0x199   :  { %1370 = vmatprep.subr.bf16.mxu0 %v1369_v59 }
 0x19c   :  { %1372 = vmatpush1.bf16.msra.mxu0 %v1371_v1 }
 0x19d   :  { %1374 = vmatprep.subr.bf16.mxu0 %v1373_v2 }
 0x1a0   :  { %1376 = vmatpush1.bf16.msra.mxu0 %v1375_v7 }
 0x1a1   :  { %1378 = vmatprep.subr.bf16.mxu0 %v1377_v8 }
 0x1a4   :  { %1380 = vmatpush1.bf16.msra.mxu0 %v1379_v12 }
 0x1a5   :  { %1382 = vmatprep.subr.bf16.mxu0 %v1381_v13 }
 0x1a8   :  { %1384 = vmatpush1.bf16.msra.mxu0 %v1383_v17 }
 0x1a9   :  { %1386 = vmatprep.subr.bf16.mxu0 %v1385_v18 }
 0x1ac   :  { %1388 = vmatpush1.bf16.msra.mxu0 %v1387_v23 }
 0x1ad   :  { %1390 = vmatprep.subr.bf16.mxu0 %v1389_v24 }
 0x1b0   :  { %1392 = vmatpush1.bf16.msra.mxu0 %v1391_v45 }
 0x1b3   :  { %887 = vmatmul.mubr.f32.vlgmr.msra.gmra.mrb[2].mxu0 %v1486_v46 }
 0x246   :  { %v1091_v27 = vpop.f32.mrb[4].mxu1 }
 0x247   :  { %v1092_v28 = vpop.f32.mrb[5].mxu1 }
 0x248   :  { %v1093_v29 = vadd.f32 %v1092_v28, %v1091_v27 }
 0x24a   :  { %v960_v34 = vadd.f32 %v1093_v29, %v747_v31 }
 0x266   :  { %v1126_v32 = vpop.f32.mrb[6].mxu1 }
 0x267   :  { %v1127_v33 = vpop.f32.mrb[7].mxu1 }
 0x268   :  { %v1128_v35 = vadd.f32 %v1127_v33, %v1126_v32 }
 0x26a   :  { %v1030_v36 = vadd.f32 %v1128_v35, %v960_v34 }
 0x26c   :  { %1035 = vst [vmem:[#allocation10 + $0x10] sm:$0xff] %v1030_v36 }
 0x286   :  { %v888_v39 = vpop.f32.mrb[2].mxu0 }
 0x287   :  { %v1463_v40 = vadd.f32 %v888_v39, %v739_v37  ;;  %v890_v41 = vpop.f32.mrb[3].mxu0 }
 0x288   :  { %v1464_v42 = vadd.f32 %v890_v41, %v743_v38 }
 0x289   :  { %1033 = vst [vmem:[#allocation10] sm:$0xff] %v1463_v40 }
 0x28a   :  { %1034 = vst [vmem:[#allocation10 + $0x8] sm:$0xff] %v1464_v42 }
 0x28b   :  { %1586 = shalt.err (!%p1583_p8)
}
 0x28c   :  { %s1587_s21 = scalar_lea.hbm %s1753_s5, 384 }
 0x28d   :  { %p1588_p9 = scmp.ne.s32.totalorder %s1753_s5, %s1587_s21  ;;  %p1591_p10 = scmp.lt.u32.totalorder %s1587_s21, %s1753_s5 }
 0x28f   :  { %p1593_p11 = pnand %p1591_p10, %p1588_p9 }
 0x291   :  { %1596 = shalt.err (!%p1593_p11)
}
 0x292   :  { %1045 = dma.vmem_to_hbm [thread:$0]  %s1043_s18, 384, %s1753_s5, [#allocation4]  }
 0x293   :  { %1603 = dma.done.wait [#allocation4], 384  }
 0x294   :  { %1604 = vsyncadd [#allocation4], 4294966912 }
 0x295   :  { %1049 = vsyncpa [#allocation3], 1 }
 0x296   :  { %1050 = vsyncpa [#allocation6], 1 }
 0x297   :  { %1051 = vsyncpa [#allocation9], 1 }
 0x298   :  { %1052 = vsyncpa [#allocation4], 1 }

</bundles_post_ra>
